<compile_context>
chip_gen: v7x
topology: tpu7x:2x2x1
jax: 0.10.0
libtpu: 0.0.40
codegen_flags: <defaults>
</compile_context>

<pallas_src>
import jax
import jax.numpy as jnp
from jax.experimental import pallas as pl
from jax.experimental.pallas import tpu as pltpu


def _cdiv(a, b):
    return (a + b - 1) // b


def _round_up(a, b):
    return _cdiv(a, b) * b


def _kernel_linear_kernel(x_ref, w_ref, b_ref, o_ref):
    # x_ref: (1, TN, IN)    row tile of tokens for one batch element
    # w_ref: (K, IN, OUT)   VMEM-resident (constant index_map)
    # b_ref: (K, 1, OUT)    VMEM-resident (f32)
    # o_ref: (1, K, TN, OUT)
    x = x_ref[0]                                   # (TN, IN)
    k_num = w_ref.shape[0]
    for k in range(k_num):                         # K is small & static
        acc = jnp.dot(x, w_ref[k], preferred_element_type=jnp.float32)
        o_ref[0, k, :, :] = (acc + b_ref[k]).astype(o_ref.dtype)


def prepare_kernel_linear_params(weight, bias):
    """One-time layout prep (do at parameter creation, NOT per forward call):
    weight (K, OUT, IN) -> (K, IN, OUT) so the MXU consumes it directly."""
    return jnp.transpose(weight, (0, 2, 1)), bias


def multi_kernel_mlp_forward(x, weight_t, bias, *, row_tile=2048, bf16_inputs=False):
    """x: (B, N, IN), weight_t: (K, IN, OUT), bias: (K, 1, OUT) -> (B, K, N, OUT)."""
    B, N, IN = x.shape
    K, IN_w, OUT = weight_t.shape
    assert IN == IN_w
    out_dtype = x.dtype

    if bf16_inputs:
        # v6e/v7x MXU is bf16-native: halves x/weight HBM + VMEM traffic with
        # no MXU penalty.  Accumulate + bias add stay f32; output dtype kept.
        x = x.astype(jnp.bfloat16)
        weight_t = weight_t.astype(jnp.bfloat16)

    # ---- row-tile selection -------------------------------------------
    # Mem-bound kernel: big tiles amortize the ~0.35 us/step pipeline
    # overhead.  Per-step double-buffered VMEM is roughly
    #   2 * ( tn*128*4  [x lane-padded 16->128]  +  K*tn*OUT*4  [out] )
    # ~= 4 MiB at tn=2048, K*OUT=128, f32 -> comfortably inside the scoped
    # VMEM defaults on v5e (16 MiB), v6e (32 MiB) and v7x (32 of 64 MiB).
    if N <= row_tile:
        tn = N                               # full-dim block is always legal
    else:
        tn = _round_up(row_tile, 8)          # partial blocks: sublane-aligned
    # Keep >= 2 grid steps so megacore / v7x's two TensorCores both get work.
    if B * _cdiv(N, tn) < 2 and N >= 16:
        tn = _round_up(_cdiv(N, 2), 8)

    grid = (B, _cdiv(N, tn))

    # NOTE: if IN grows past a few hundred, add a k-reduction grid axis with a
    # VMEM f32 accumulator (pl.when init/finalize) instead of growing the
    # resident (K, IN, OUT) weight block unboundedly; at very large K*OUT also
    # give the weight/bias specs pipeline_mode=pl.Buffered(1) so the constant-
    # index resident blocks are not double-buffered.  Irrelevant at ~8 KiB.
    return pl.pallas_call(
        _kernel_linear_kernel,
        out_shape=jax.ShapeDtypeStruct((B, K, N, OUT), out_dtype),
        grid_spec=pltpu.PrefetchScalarGridSpec(
            num_scalar_prefetch=0,
            grid=grid,
            in_specs=[
                pl.BlockSpec((1, tn, IN), lambda b, n: (b, n, 0)),     # x row tile
                pl.BlockSpec((K, IN, OUT), lambda b, n: (0, 0, 0)),    # resident W
                pl.BlockSpec((K, 1, OUT), lambda b, n: (0, 0, 0)),     # resident bias
            ],
            out_specs=pl.BlockSpec((1, K, tn, OUT), lambda b, n: (b, 0, n, 0)),
        ),
        compiler_params=pltpu.CompilerParams(
            dimension_semantics=("parallel", "parallel"),
        ),
    )(x, weight_t, bias)


if __name__ == "__main__":
    # Module hyperparameters (small, consistent with the forward).
    in_feature = 16
    hidden_feature = 32
    filter_number = 4
    batch = 2
    seq = 8

    key = jax.random.PRNGKey(0)
    k_x, k_w, k_b = jax.random.split(key, 3)

    # Deterministic "randn"-style parameter init (matches shapes in __init__).
    weight = jax.random.normal(
        k_w, (filter_number, hidden_feature, in_feature), dtype=jnp.float32
    )
    bias = jax.random.normal(
        k_b, (filter_number, 1, hidden_feature), dtype=jnp.float32
    )
    x = jax.random.normal(k_x, (batch, seq, in_feature), dtype=jnp.float32)

    # One-time parameter layout prep (outside the per-call hot path).
    weight_t, bias_p = prepare_kernel_linear_params(weight, bias)

    out = multi_kernel_mlp_forward(x, weight_t, bias_p)
    out = jax.block_until_ready(out)

    # Pure-JAX reference: matmul(x.unsqueeze(-3), W.transpose(-1,-2)) + bias
    ref = jnp.einsum("bni,koi->bkno", x, weight) + bias[None, :, :, :]
    assert out.shape == (batch, filter_number, seq, hidden_feature)
    assert jnp.allclose(out, ref, atol=1e-4, rtol=1e-4), "mismatch vs reference"

    print("KERNEL_OK")
</pallas_src>

<mosaic_0001>
module attributes {stable_mosaic.version = 11 : i64} {
  func.func @_kernel_linear_kernel(%arg0: i32, %arg1: i32, %arg2: memref<1x8x16xf32, #tpu.memory_space<vmem>>, %arg3: memref<4x16x32xf32, #tpu.memory_space<vmem>>, %arg4: memref<4x1x32xf32, #tpu.memory_space<vmem>>, %arg5: memref<1x4x8x32xf32, #tpu.memory_space<vmem>>) attributes {dimension_semantics = [#tpu.dimension_semantics<parallel>, #tpu.dimension_semantics<parallel>], iteration_bounds = array<i64: 2, 1>, scalar_prefetch = 0 : i64, scratch_operands = 0 : i64, tpu.core_type = #tpu.core_type<tc>, window_params = [{transform_indices = @transform_0, window_bounds = array<i64: 1, 8, 16>}, {pipeline_mode = #tpu.pipeline_mode<synchronous>, transform_indices = @transform_1, window_bounds = array<i64: 4, 16, 32>}, {pipeline_mode = #tpu.pipeline_mode<synchronous>, transform_indices = @transform_2, window_bounds = array<i64: 4, 1, 32>}, {transform_indices = @transform_3, window_bounds = array<i64: 1, 4, 8, 32>}]} {
    %c0 = arith.constant 0 : index
    %c0_0 = arith.constant 0 : index
    %c0_1 = arith.constant 0 : index
    %0 = vector.load %arg2[%c0, %c0_0, %c0_1] : memref<1x8x16xf32, #tpu.memory_space<vmem>>, vector<1x8x16xf32>
    %1 = vector.shape_cast %0 : vector<1x8x16xf32> to vector<8x16xf32>
    %c0_2 = arith.constant 0 : index
    %c0_3 = arith.constant 0 : index
    %c0_4 = arith.constant 0 : index
    %2 = vector.load %arg3[%c0_2, %c0_3, %c0_4] : memref<4x16x32xf32, #tpu.memory_space<vmem>>, vector<1x16x32xf32>
    %3 = vector.shape_cast %2 : vector<1x16x32xf32> to vector<16x32xf32>
    %cst = arith.constant dense<0.000000e+00> : vector<8x32xf32>
    %4 = tpu.matmul %1, %3, %cst {dimension_numbers = #tpu.dot_dimension_numbers<[1], [0], [0], [1], [0, 0, 1, 1], [], []>} : vector<8x16xf32>, vector<16x32xf32>, vector<8x32xf32> -> vector<8x32xf32>
    %c0_5 = arith.constant 0 : index
    %c0_6 = arith.constant 0 : index
    %c0_7 = arith.constant 0 : index
    %5 = vector.load %arg4[%c0_5, %c0_6, %c0_7] : memref<4x1x32xf32, #tpu.memory_space<vmem>>, vector<1x1x32xf32>
    %6 = vector.shape_cast %5 : vector<1x1x32xf32> to vector<1x32xf32>
    %7 = vector.broadcast %6 : vector<1x32xf32> to vector<8x32xf32>
    %8 = arith.addf %4, %7 : vector<8x32xf32>
    %c0_8 = arith.constant 0 : index
    %c0_9 = arith.constant 0 : index
    %c0_10 = arith.constant 0 : index
    %c0_11 = arith.constant 0 : index
    %9 = vector.load %arg5[%c0_8, %c0_9, %c0_10, %c0_11] : memref<1x4x8x32xf32, #tpu.memory_space<vmem>>, vector<1x1x8x32xf32>
    %10 = vector.shape_cast %9 : vector<1x1x8x32xf32> to vector<8x32xf32>
    %11 = vector.shape_cast %8 : vector<8x32xf32> to vector<1x1x8x32xf32>
    tpu.vector_store %arg5[%c0_8, %c0_9, %c0_10, %c0_11], %11 {strides = array<i32>} : memref<1x4x8x32xf32, #tpu.memory_space<vmem>>, vector<1x1x8x32xf32>,
    %c1 = arith.constant 1 : index
    %c0_12 = arith.constant 0 : index
    %c0_13 = arith.constant 0 : index
    %12 = vector.load %arg3[%c1, %c0_12, %c0_13] : memref<4x16x32xf32, #tpu.memory_space<vmem>>, vector<1x16x32xf32>
    %13 = vector.shape_cast %12 : vector<1x16x32xf32> to vector<16x32xf32>
    %cst_14 = arith.constant dense<0.000000e+00> : vector<8x32xf32>
    %14 = tpu.matmul %1, %13, %cst_14 {dimension_numbers = #tpu.dot_dimension_numbers<[1], [0], [0], [1], [0, 0, 1, 1], [], []>} : vector<8x16xf32>, vector<16x32xf32>, vector<8x32xf32> -> vector<8x32xf32>
    %c1_15 = arith.constant 1 : index
    %c0_16 = arith.constant 0 : index
    %c0_17 = arith.constant 0 : index
    %15 = vector.load %arg4[%c1_15, %c0_16, %c0_17] : memref<4x1x32xf32, #tpu.memory_space<vmem>>, vector<1x1x32xf32>
    %16 = vector.shape_cast %15 : vector<1x1x32xf32> to vector<1x32xf32>
    %17 = vector.broadcast %16 : vector<1x32xf32> to vector<8x32xf32>
    %18 = arith.addf %14, %17 : vector<8x32xf32>
    %c0_18 = arith.constant 0 : index
    %c1_19 = arith.constant 1 : index
    %c0_20 = arith.constant 0 : index
    %c0_21 = arith.constant 0 : index
    %19 = vector.load %arg5[%c0_18, %c1_19, %c0_20, %c0_21] : memref<1x4x8x32xf32, #tpu.memory_space<vmem>>, vector<1x1x8x32xf32>
    %20 = vector.shape_cast %19 : vector<1x1x8x32xf32> to vector<8x32xf32>
    %21 = vector.shape_cast %18 : vector<8x32xf32> to vector<1x1x8x32xf32>
    tpu.vector_store %arg5[%c0_18, %c1_19, %c0_20, %c0_21], %21 {strides = array<i32>} : memref<1x4x8x32xf32, #tpu.memory_space<vmem>>, vector<1x1x8x32xf32>,
    %c2 = arith.constant 2 : index
    %c0_22 = arith.constant 0 : index
    %c0_23 = arith.constant 0 : index
    %22 = vector.load %arg3[%c2, %c0_22, %c0_23] : memref<4x16x32xf32, #tpu.memory_space<vmem>>, vector<1x16x32xf32>
    %23 = vector.shape_cast %22 : vector<1x16x32xf32> to vector<16x32xf32>
    %cst_24 = arith.constant dense<0.000000e+00> : vector<8x32xf32>
    %24 = tpu.matmul %1, %23, %cst_24 {dimension_numbers = #tpu.dot_dimension_numbers<[1], [0], [0], [1], [0, 0, 1, 1], [], []>} : vector<8x16xf32>, vector<16x32xf32>, vector<8x32xf32> -> vector<8x32xf32>
    %c2_25 = arith.constant 2 : index
    %c0_26 = arith.constant 0 : index
    %c0_27 = arith.constant 0 : index
    %25 = vector.load %arg4[%c2_25, %c0_26, %c0_27] : memref<4x1x32xf32, #tpu.memory_space<vmem>>, vector<1x1x32xf32>
    %26 = vector.shape_cast %25 : vector<1x1x32xf32> to vector<1x32xf32>
    %27 = vector.broadcast %26 : vector<1x32xf32> to vector<8x32xf32>
    %28 = arith.addf %24, %27 : vector<8x32xf32>
    %c0_28 = arith.constant 0 : index
    %c2_29 = arith.constant 2 : index
    %c0_30 = arith.constant 0 : index
    %c0_31 = arith.constant 0 : index
    %29 = vector.load %arg5[%c0_28, %c2_29, %c0_30, %c0_31] : memref<1x4x8x32xf32, #tpu.memory_space<vmem>>, vector<1x1x8x32xf32>
    %30 = vector.shape_cast %29 : vector<1x1x8x32xf32> to vector<8x32xf32>
    %31 = vector.shape_cast %28 : vector<8x32xf32> to vector<1x1x8x32xf32>
    tpu.vector_store %arg5[%c0_28, %c2_29, %c0_30, %c0_31], %31 {strides = array<i32>} : memref<1x4x8x32xf32, #tpu.memory_space<vmem>>, vector<1x1x8x32xf32>,
    %c3 = arith.constant 3 : index
    %c0_32 = arith.constant 0 : index
    %c0_33 = arith.constant 0 : index
    %32 = vector.load %arg3[%c3, %c0_32, %c0_33] : memref<4x16x32xf32, #tpu.memory_space<vmem>>, vector<1x16x32xf32>
    %33 = vector.shape_cast %32 : vector<1x16x32xf32> to vector<16x32xf32>
    %cst_34 = arith.constant dense<0.000000e+00> : vector<8x32xf32>
    %34 = tpu.matmul %1, %33, %cst_34 {dimension_numbers = #tpu.dot_dimension_numbers<[1], [0], [0], [1], [0, 0, 1, 1], [], []>} : vector<8x16xf32>, vector<16x32xf32>, vector<8x32xf32> -> vector<8x32xf32>
    %c3_35 = arith.constant 3 : index
    %c0_36 = arith.constant 0 : index
    %c0_37 = arith.constant 0 : index
    %35 = vector.load %arg4[%c3_35, %c0_36, %c0_37] : memref<4x1x32xf32, #tpu.memory_space<vmem>>, vector<1x1x32xf32>
    %36 = vector.shape_cast %35 : vector<1x1x32xf32> to vector<1x32xf32>
    %37 = vector.broadcast %36 : vector<1x32xf32> to vector<8x32xf32>
    %38 = arith.addf %34, %37 : vector<8x32xf32>
    %c0_38 = arith.constant 0 : index
    %c3_39 = arith.constant 3 : index
    %c0_40 = arith.constant 0 : index
    %c0_41 = arith.constant 0 : index
    %39 = vector.load %arg5[%c0_38, %c3_39, %c0_40, %c0_41] : memref<1x4x8x32xf32, #tpu.memory_space<vmem>>, vector<1x1x8x32xf32>
    %40 = vector.shape_cast %39 : vector<1x1x8x32xf32> to vector<8x32xf32>
    %41 = vector.shape_cast %38 : vector<8x32xf32> to vector<1x1x8x32xf32>
    tpu.vector_store %arg5[%c0_38, %c3_39, %c0_40, %c0_41], %41 {strides = array<i32>} : memref<1x4x8x32xf32, #tpu.memory_space<vmem>>, vector<1x1x8x32xf32>,
    return
  }
  func.func @transform_0(%arg0: i32, %arg1: i32) -> (i32, i32, i32) {
    %c0_i32 = arith.constant 0 : i32
    %c0_i32_0 = arith.constant 0 : i32
    return %arg0, %arg1, %c0_i32 : i32, i32, i32
  }
  func.func @transform_1(%arg0: i32, %arg1: i32) -> (i32, i32, i32) {
    %c0_i32 = arith.constant 0 : i32
    %c0_i32_0 = arith.constant 0 : i32
    %c0_i32_1 = arith.constant 0 : i32
    %c0_i32_2 = arith.constant 0 : i32
    return %c0_i32, %c0_i32_0, %c0_i32_1 : i32, i32, i32
  }
  func.func @transform_2(%arg0: i32, %arg1: i32) -> (i32, i32, i32) {
    %c0_i32 = arith.constant 0 : i32
    %c0_i32_0 = arith.constant 0 : i32
    %c0_i32_1 = arith.constant 0 : i32
    %c0_i32_2 = arith.constant 0 : i32
    return %c0_i32, %c0_i32_0, %c0_i32_1 : i32, i32, i32
  }
  func.func @transform_3(%arg0: i32, %arg1: i32) -> (i32, i32, i32, i32) {
    %c0_i32 = arith.constant 0 : i32
    %c0_i32_0 = arith.constant 0 : i32
    %c0_i32_1 = arith.constant 0 : i32
    return %arg0, %c0_i32, %arg1, %c0_i32_0 : i32, i32, i32, i32
  }
}

</mosaic_0001>

<bundles_post_ra>
// kernel: tpu_custom_call.1
= control target key start
LH: loop header
LB: loop body
LE: loop exit
PB: predicated region body
PF: predicated region fallthrough
CT: control target
= control target key end

     0   :  { %8 = vsyncpa [#allocation3], 0  ;;  %s1238_s0 = inlined_call_operand.hbm [shape: f32[2,8,16], index: 0, kind: input, shape index: {}]   ;;  %s1239_s1 = inlined_call_operand.hbm [shape: f32[4,16,32], index: 1, kind: input, shape index: {}]   ;;  %s1240_s2 = inlined_call_operand.vmem [shape: f32[4,1,32], index: 2, kind: input, shape index: {}]   ;;  %s1241_s3 = inlined_call_operand.hbm [shape: f32[2,4,8,32], index: 3, kind: output, shape index: {}]  }
   0x1   :  { %10 = vsyncpa [#allocation3 + $0x1], 0 }
   0x2   :  { %11 = vsyncpa [#allocation6], 0 }
   0x3   :  { %12 = vsyncpa [#allocation4], 0 }
   0x4   :  { %14 = vsyncpa [#allocation4 + $0x1], 0  ;;  %s1001_s12 = smov 0   ;;  %s1003_s13 = smov 0  }
   0x5   :  { %s1005_s14 = smov 0   ;;  %s1007_s15 = smov 0  }
   0x6   :  { %s1009_s16 = smov 0   ;;  %s1011_s17 = smov 0  }
   0x7 LB: > { %s662_s18 = sadd.s32 4294967295, %s969_s17   ;;  %s663_s19 = sadd.s32 4294967294, %s969_s17   ;;  %s969_s17 = sphi %s1011_s17, %s20_s17   ;;  %s965_s16 = sphi %s1009_s16, %s1265_s16   ;;  %s961_s15 = sphi %s1007_s15, %s1264_s15   ;;  %s957_s14 = sphi %s1005_s14, %s1263_s14   ;;  %s953_s13 = sphi %s1003_s13, %s1262_s13   ;;  %s949_s12 = sphi %s1001_s12, %s1261_s12  }
   0x8   : > { %p54_p0 = scmp.ne.s32.totalorder %s953_s13, %s949_s12  ;;  %p1035_p1 = scmp.eq.s32.totalorder %s662_s18, 0 }
   0x9   : > { %p1039_p2 = scmp.eq.s32.totalorder %s662_s18, 1  ;;  %p128_p3 = scmp.eq.s32.totalorder %s663_s19, 1 }
   0xa   : > { %s1246_s20 = scalar_select %p1035_p1, 1, 0 }
   0xb   : > { %s1247_s21 = scalar_select %p1039_p2, 1, 0 }
   0xc   : > { %p1045_p4 = por %p1035_p1, %p54_p0  ;;  %p664_p5 = scmp.ge.s32.totalorder %s969_s17, 1 }
   0xd   : > { %p1050_p6 = por %p128_p3, %p54_p0  ;;  %p135_p7 = scmp.lt.s32.totalorder %s969_s17, 3 }
   0xe   : > { %s1248_s22 = scalar_select %p1045_p4, 1, 0 }
   0xf   : > { %s1249_s23 = scalar_select %p1050_p6, 1, 0 }
  0x10   : > { %p1055_p8 = pnand %p664_p5, %p135_p7  ;;  %s971_s25 = smov [#allocation5]  }
  0x11   : > { %s147_s26 = sshll.u32 %s971_s25, 4  ;;  %s32_s28 = sadd.s32 1, %s965_s16  ;;  %s148_s26 = int_to_ptr.vmem [resolvable:$true] %s147_s26 }
  0x12   : > { %s1250_s24 = scalar_select %p1055_p8, 1, 0 }
  0x13   : > { %p753_p9 = pneg %p1055_p8  ;;  %s825_s4 = scalar_lea.hbm %s1239_s1, 1024 }
  0x14   : > { %p826_p12 = scmp.ne.s32.totalorder %s1239_s1, %s825_s4  ;;  %p832_p5 = scmp.lt.u32.totalorder %s825_s4, %s1239_s1 }
  0x15   : > { %p1064_p11 = pnand %p753_p9, %p1035_p1 }
  0x17   : > { %p827_p13 = pneg %p1064_p11 }
  0x19   : > { %p828_p0 = pnand %p827_p13, %p826_p12 }
  0x1b   : > { %p829_p3 = pneg %p828_p0 }
  0x1d   : > { %p834_p7 = pnand %p832_p5, %p829_p3 }
  0x1f   : > { %837 = shalt.err (!%p834_p7)
}
  0x20   : > { %s838_s9 = scalar_lea.vmem %s148_s26, 1024  ;;  %p846_p1 = scmp.lt.s32.totalorder %s148_s26, %s148_s26 }
  0x21   : > { %p839_p9 = scmp.ne.s32.totalorder %s148_s26, %s838_s9  ;;  %p847_p4 = scmp.lt.s32.totalorder %s838_s9, %s838_s9 }
  0x23   : > { %p841_p10 = pnand %p839_p9, %p827_p13  ;;  %p848_p8 = por %p847_p4, %p846_p1 }
  0x25   : > { %p842_p6 = pneg %p841_p10 }
  0x27   : > { %p849_p2 = pnand %p848_p8, %p842_p6 }
  0x29   : > { %852 = shalt.err (!%p849_p2)
}
  0x2a   : > { %s972_s10 = smov 128   ;;  %s973_s11 = smov 8  }
  0x2b   : > { %756 = dma.hbm_to_vmem [thread:$0]  (!%p1064_p11), %s1239_s1, 1024, %s148_s26, [#allocation6], %s972_s10, %s972_s10, %s973_s11  }
  0x2c   : > { %p34_p1 = scmp.ge.s32.totalorder %s32_s28, 2  ;;  %s41_s25 = sadd.s32 1, %s957_s14 }
  0x2d   : > { %p48_p2 = scmp.ne.s32.totalorder %s957_s14, %s953_s13  ;;  %p49_p4 = scmp.eq.s32.totalorder %s969_s17, 0 }
  0x2e   : > { %s1267_s28 = smov (%p34_p1, %s32_s28), 0  ;;  %p1253_p8 = scmp.ne.s32.totalorder %s1247_s21, 0 }
  0x2f   : > { %p1091_p6 = por %p49_p4, %p48_p2  ;;  %s36_s27 = ssub.s32 %s965_s16, %s1267_s28 }
  0x30   : > { %p1097_p10 = por %p1253_p8, %p48_p2  ;;  %p766_p12 = scmp.lt.s32.totalorder %s969_s17, 2 }
  0x31   : > { %p39_p11 = scmp.eq.s32.totalorder %s36_s27, 0  ;;  %s164_s26 = sand.u32 1, %s957_s14  }
  0x32   : > { %s667_s4 = sshll.u32 %s164_s26, 3  ;;  %s668_s6 = sshll.u32 %s965_s16, 7 }
  0x33   : > { %s1106_s5 = scalar_select %p39_p11, %s957_s14, %s41_s25  }
  0x34   : > { %s1112_s9 = scalar_lea.hbm %s1238_s0, %s668_s6  ;;  %s168_s21 = scalar_lea.vmem [#allocation2], %s667_s4 }
  0x35   : > { %s176_s10 = sshll.u32 %s168_s21, 4  ;;  %p1118_p13 = pnand %p766_p12, %p1091_p6  ;;  %s1114_s10 = int_to_ptr.vmem [resolvable:$true] %s176_s10 }
  0x36   : > { %s165_s18 = scalar_lea.sflag [#allocation3], %s164_s26  ;;  %s853_s19 = scalar_lea.hbm %s1112_s9, 128 }
  0x37   : > { %p854_p0 = scmp.ne.s32.totalorder %s1112_s9, %s853_s19  ;;  %p855_p3 = pneg %p1118_p13 }
  0x38   : > { %s858_s4 = scalar_lea.hbm %s1238_s0, 256  ;;  %p859_p9 = scmp.lt.u32.totalorder %s1112_s9, %s1238_s0 }
  0x39   : > { %p856_p5 = pnand %p855_p3, %p854_p0  ;;  %p860_p1 = scmp.lt.u32.totalorder %s858_s4, %s853_s19 }
  0x3a   : > { %p862_p4 = scmp.lt.u32.totalorder %s853_s19, %s1112_s9 }
  0x3b   : > { %p857_p7 = pneg %p856_p5  ;;  %p861_p2 = por %p860_p1, %p859_p9 }
  0x3d   : > { %p863_p6 = por %p862_p4, %p861_p2 }
  0x3f   : > { %p864_p8 = pnand %p863_p6, %p857_p7 }
  0x41   : > { %867 = shalt.err (!%p864_p8)
}
  0x42   : > { %s868_s26 = scalar_lea.vmem %s1114_s10, 128  ;;  %s974_s7 = smov [#allocation2]  }
  0x43   : > { %p869_p12 = scmp.ne.s32.totalorder %s1114_s10, %s868_s26  ;;  %s873_s8 = sshll.u32 %s974_s7, 4  ;;  %s874_s8 = int_to_ptr.vmem [resolvable:$false] %s873_s8 }
  0x44   : > { %s875_s21 = scalar_lea.vmem %s874_s8, 256  ;;  %p876_p5 = scmp.lt.s32.totalorder %s1114_s10, %s874_s8 }
  0x45   : > { %p871_p11 = pnand %p869_p12, %p855_p3  ;;  %p877_p9 = scmp.lt.s32.totalorder %s875_s21, %s868_s26 }
  0x47   : > { %p872_p0 = pneg %p871_p11  ;;  %p878_p1 = por %p877_p9, %p876_p5 }
  0x49   : > { %p879_p2 = pnand %p878_p1, %p872_p0 }
  0x4b   : > { %882 = shalt.err (!%p879_p2)
}
  0x4c   : > { %760 = dma.hbm_to_vmem [thread:$0]  (!%p1118_p13), %s1112_s9, 128, %s1114_s10, %s165_s18  }
  0x4d   : > { %p1256_p7 = scmp.ne.s32.totalorder %s1250_s24, 0 }
  0x4e   : > { %s1150_s19 = sand.u32 (!%p1256_p7), 1, %s953_s13   ;;  %p1257_p3 = scmp.ne.s32.totalorder (!%p1256_p7), %s1248_s22, 0 }
  0x4f   : > { %185 = sbr.rel (%p1256_p7) target bundleno = 330 (0x14a), region = 32  ;;  %s670_s25 = sshll.u32 (!%p1256_p7), %s1150_s19, 3 }
  0x50   : > { %s188_s27 = scalar_lea.sflag (!%p1256_p7), [#allocation3], %s1150_s19  ;;  %s191_s4 = scalar_lea.vmem (!%p1256_p7), [#allocation2], %s670_s25 }
  0x56   : > { %936 = dma.done.wait (%p1257_p3), %s188_s27, 128  }
  0x57   : > { %938 = vsyncadd (%p1257_p3), %s188_s27, 4294967168  ;;  %p1258_p4 = scmp.ne.s32.totalorder %s1246_s20, 0 }
  0x59   : > { %940 = dma.done.wait (%p1258_p4), [#allocation6], 1024  }
  0x5a   : > { %942 = vsyncadd (%p1258_p4), [#allocation6], 4294966272  ;;  %v975_v0 = vmov 0.0|0.0   ;;  %vm976_vm0 = vmmov 0   ;;  %v977_v1 = vmov 0.0   ;;  %v219_v2 = vld [vmem:[#allocation5] sm:$0xff] }
  0x5b   : > { %733 = vmatprep.subr.bf16.mxu0 %v975_v0  ;;  %736 = vmatprep.subr.bf16.mxu1 %v975_v0  ;;  %v220_v3 = vld [vmem:[#allocation5 + $0x8] sm:$0xff]  ;;  %v305_v4 = vld [vmem:[#allocation5 + $0x10] sm:$0xff]  ;;  %v306_v6 = vld [vmem:[#allocation5 + $0x18] sm:$0xff]  ;;  %vm228_vm1 = vcmask 130048   ;;  %s672_s20 = sshll.u32 %s1150_s19, 5  ;;  %vm302_vm2 = vcmask 261120  }
  0x5c   : > { %709 = vmatprep.mubr.msk.f32.mxu0 %vm976_vm0, %v977_v1  ;;  %716 = vmatprep.mubr.msk.f32.mxu1 %vm976_vm0, %v977_v1  ;;  %v734_v5 = vpack.c.bf16 %v220_v3, %v219_v2  ;;  %v388_v7 = vld [vmem:[#allocation5 + $0x20] sm:$0xff]  ;;  %v737_v8 = vpack.c.bf16 %v306_v6, %v305_v4  ;;  %v389_v9 = vld [vmem:[#allocation5 + $0x28] sm:$0xff]  ;;  %v471_v10 = vld [vmem:[#allocation5 + $0x30] sm:$0xff]  ;;  %s217_s11 = scalar_lea.vmem [#allocation7], %s672_s20  ;;  %s692_s26 = sshll.u32 %s961_s15, 9 }
  0x5d   : > { %v472_v11 = vld [vmem:[#allocation5 + $0x38] sm:$0xff]  ;;  %v740_v13 = vpack.c.bf16 %v389_v9, %v388_v7  ;;  %v673_v15 = vld [vmem:[%s1240_s2] ss:$0 sm:$0xff]  ;;  %v676_v16 = vld [vmem:[%s1240_s2 + $0x1] ss:$0 sm:$0xff]  ;;  %s568_s18 = sshll.u32 %s217_s11, 4  ;;  %s1187_s25 = scalar_lea.hbm %s1241_s3, %s692_s26  ;;  %s1181_s18 = int_to_ptr.vmem [resolvable:$true] %s568_s18 }
  0x5e   : > { %735 = vmatpush3.bf16.msra.mxu0 %v734_v5  ;;  %v218_v12 = vld [vmem:[%s191_s4] sm:$0xff]  ;;  %738 = vmatpush3.bf16.msra.mxu1 %v737_v8  ;;  %v743_v14 = vpack.c.bf16 %v472_v11, %v471_v10  ;;  %s554_s27 = scalar_lea.sflag [#allocation4], %s1150_s19  ;;  %s883_s4 = scalar_lea.vmem %s1181_s18, 512 }
  0x5f   : > { %739 = vmatprep.subr.bf16.mxu0 %v975_v0  ;;  %742 = vmatprep.subr.bf16.mxu1 %v975_v0  ;;  %v680_v23 = vld [vmem:[%s1240_s2 + $0x2] ss:$0 sm:$0xff]  ;;  %v684_v24 = vld [vmem:[%s1240_s2 + $0x3] ss:$0 sm:$0xff]  ;;  %p884_p13 = scmp.ne.s32.totalorder %s1181_s18, %s883_s4  ;;  %s978_s20 = smov [#allocation7]  }
  0x60   : > { %s887_s22 = sshll.u32 %s978_s20, 4  ;;  %s888_s22 = int_to_ptr.vmem [resolvable:$false] %s887_s22 }
  0x61   : > { %710 = vmatmul.mubr.msk.f32.vlgmr.msra.gmra.mrb[0].mxu0 %vm228_vm1, %v218_v12  ;;  %717 = vmatmul.mubr.msk.f32.vlgmr.msra.gmra.mrb[0].mxu1 %vm228_vm1, %v218_v12  ;;  %p885_p6 = pnand %p884_p13, %p1097_p10  ;;  %s889_s24 = scalar_lea.vmem %s888_s22, 1024 }
  0x62   : > { %741 = vmatpush3.bf16.msra.mxu0 %v740_v13  ;;  %744 = vmatpush3.bf16.msra.mxu1 %v743_v14  ;;  %p890_p12 = scmp.lt.s32.totalorder %s1181_s18, %s888_s22  ;;  %p891_p11 = scmp.lt.s32.totalorder %s889_s24, %s883_s4 }
  0x63   : > { %723 = vmatprep.mubr.msk.f32.mxu0 %vm976_vm0, %v977_v1  ;;  %730 = vmatprep.mubr.msk.f32.mxu1 %vm976_vm0, %v977_v1  ;;  %p886_p8 = pneg %p885_p6 }
  0x64   : > { %p892_p0 = por %p891_p11, %p890_p12 }
  0x65   : > { %724 = vmatmul.mubr.msk.f32.vlgmr.msra.gmra.mrb[2].mxu0 %vm228_vm1, %v218_v12  ;;  %731 = vmatmul.mubr.msk.f32.vlgmr.msra.gmra.mrb[2].mxu1 %vm228_vm1, %v218_v12 }
  0x66   : > { %p893_p5 = pnand %p892_p0, %p886_p8 }
 0x134   : > { %v298_v17 = vpop.f32.mrb[0].mxu0  ;;  %v381_v19 = vpop.f32.mrb[0].mxu1 }
 0x135   : > { %v299_v18 = vadd.f32 %v673_v15, %v298_v17  ;;  %v711_v20 = vpop.f32.mrb[1].mxu0  ;;  %v382_v21 = vadd.f32 %v676_v16, %v381_v19  ;;  %v718_v22 = vpop.f32.mrb[1].mxu1 }
 0x137   : > { %303 = vst.msk [vmem:[%s217_s11] sm:$0xff] %vm302_vm2, %v299_v18  ;;  %678 = vst.msk [vmem:[%s217_s11 + $0x8] sm:$0xff] %vm302_vm2, %v382_v21 }
 0x138   : > { %v464_v25 = vpop.f32.mrb[2].mxu0  ;;  %v547_v27 = vpop.f32.mrb[2].mxu1 }
 0x139   : > { %v465_v26 = vadd.f32 %v680_v23, %v464_v25  ;;  %v725_v28 = vpop.f32.mrb[3].mxu0  ;;  %v548_v29 = vadd.f32 %v684_v24, %v547_v27  ;;  %v732_v30 = vpop.f32.mrb[3].mxu1 }
 0x13b   : > { %682 = vst.msk [vmem:[%s217_s11 + $0x10] sm:$0xff] %vm302_vm2, %v465_v26  ;;  %686 = vst.msk [vmem:[%s217_s11 + $0x18] sm:$0xff] %vm302_vm2, %v548_v29 }
 0x13c   : > { %896 = shalt.err (!%p893_p5)
}
 0x13d   : > { %s897_s9 = scalar_lea.hbm %s1187_s25, 512  ;;  %s901_s29 = scalar_lea.hbm %s1241_s3, 1024 }
 0x13e   : > { %p898_p9 = scmp.ne.s32.totalorder %s1187_s25, %s897_s9  ;;  %p902_p7 = scmp.lt.u32.totalorder %s1187_s25, %s1241_s3 }
 0x13f   : > { %p903_p3 = scmp.lt.u32.totalorder %s901_s29, %s897_s9  ;;  %p905_p13 = scmp.lt.u32.totalorder %s897_s9, %s1187_s25 }
 0x140   : > { %p899_p1 = pnand %p898_p9, %p1097_p10 }
 0x141   : > { %p904_p4 = por %p903_p3, %p902_p7 }
 0x142   : > { %p900_p2 = pneg %p899_p1 }
 0x143   : > { %p906_p6 = por %p905_p13, %p904_p4 }
 0x145   : > { %p907_p8 = pnand %p906_p6, %p900_p2 }
 0x147   : > { %910 = shalt.err (!%p907_p8)
}
 0x148   : > { %s979_s7 = smov 128   ;;  %s980_s8 = smov 8  }
 0x149   : > { %751 = dma.vmem_to_hbm [thread:$0]  (%p1097_p10), %s1181_s18, 512, %s1187_s25, %s554_s27, %s979_s7, %s979_s7, %s980_s8  }
 0x14a PF: > { %s583_s21 = sand.u32 1, %s949_s12   ;;  %p1259_p12 = scmp.ne.s32.totalorder %s1249_s23, 0 }
 0x14b   : > { %p1260_p11 = scmp.ge.s32.totalorder %s969_s17, 2  ;;  %s584_s15 = scalar_lea.sflag [#allocation4], %s583_s21 }
 0x14d   : > { %p762_p0 = pnand %p1260_p11, %p1259_p12 }
 0x14f   : > { %944 = dma.done.wait (!%p762_p0), %s584_s15, 512  }
 0x150   : > { %946 = vsyncadd (!%p762_p0), %s584_s15, 4294966784  ;;  %s20_s17 = sadd.s32 1, %s969_s17   ;;  %s1261_s12 = smov %s953_s13 }
 0x151   : > { %p17_p5 = scmp.ge.s32.totalorder %s20_s17, 4   ;;  %s1262_s13 = smov %s957_s14 }
 0x152   : > { %s1263_s14 = smov %s1106_s5  ;;  %s1264_s15 = smov %s965_s16 }
 0x153   : > { %s1265_s16 = smov %s1267_s28  ;;  %19 = sbr.rel (!%p17_p5) target bundleno = 7 (0x7), region = 90 }
 0x15a   :  { %589 = vsyncpa [#allocation3], 1 }
 0x15b   :  { %591 = vsyncpa [#allocation3 + $0x1], 1 }
 0x15c   :  { %592 = vsyncpa [#allocation6], 1 }
 0x15d   :  { %593 = vsyncpa [#allocation4], 1 }
 0x15e   :  { %595 = vsyncpa [#allocation4 + $0x1], 1 }

</bundles_post_ra>
